<compile_context>
chip_gen: v7x
topology: tpu7x:2x2x1
jax: 0.10.0
libtpu: 0.0.40
codegen_flags: <defaults>
</compile_context>

<pallas_src>
import functools

import numpy as np
import jax
import jax.numpy as jnp
from jax.experimental import pallas as pl
from jax.experimental.pallas import tpu as pltpu
from scipy.optimize import linear_sum_assignment


def _round_up(x, m):
    return ((x + m - 1) // m) * m


def _cost_kernel(prob_ref, boxes_ref, neg_onehot_ref, tgt_boxes_ref, out_ref,
                 *, w_bbox, w_giou):
    # ---- cost_class = -w_class * prob[:, tgt_ids] via pre-scaled one-hot on the MXU
    cost_class = jnp.dot(prob_ref[...], neg_onehot_ref[...],
                         preferred_element_type=jnp.float32)       # [TN, TT]

    # ---- box coordinates ------------------------------------------------------
    b = boxes_ref[...]                                             # [TN, 4] f32
    pcx, pcy, pw, ph = b[:, 0:1], b[:, 1:2], b[:, 2:3], b[:, 3:4]  # [TN, 1]
    t = tgt_boxes_ref[...]                                         # [4, TT] f32
    tcx, tcy, tw, th = t[0:1, :], t[1:2, :], t[2:3, :], t[3:4, :]  # [1, TT]

    # ---- L1 cdist (torch.cdist, p=1) on (cx, cy, w, h) ------------------------
    cost_bbox = (jnp.abs(pcx - tcx) + jnp.abs(pcy - tcy)
                 + jnp.abs(pw - tw) + jnp.abs(ph - th))            # [TN, TT]

    # ---- generalized box IoU (cxcywh -> xyxy) ----------------------------------
    px1, px2 = pcx - 0.5 * pw, pcx + 0.5 * pw
    py1, py2 = pcy - 0.5 * ph, pcy + 0.5 * ph
    tx1, tx2 = tcx - 0.5 * tw, tcx + 0.5 * tw
    ty1, ty2 = tcy - 0.5 * th, tcy + 0.5 * th

    area_p = (px2 - px1) * (py2 - py1)                             # [TN, 1]
    area_t = (tx2 - tx1) * (ty2 - ty1)                             # [1, TT]

    inter_w = jnp.maximum(jnp.minimum(px2, tx2) - jnp.maximum(px1, tx1), 0.0)
    inter_h = jnp.maximum(jnp.minimum(py2, ty2) - jnp.maximum(py1, ty1), 0.0)
    inter = inter_w * inter_h                                      # [TN, TT]
    union = area_p + area_t - inter
    iou = inter * pl.reciprocal(union, approx=True)                # EUP slot

    # enclosing-box extents are non-negative for valid (w,h >= 0) boxes: no clamp
    enc_w = jnp.maximum(px2, tx2) - jnp.minimum(px1, tx1)
    enc_h = jnp.maximum(py2, ty2) - jnp.minimum(py1, ty1)
    enc_area = enc_w * enc_h
    # -giou = (enc_area - union)/enc_area - iou  (negate folded in, one mul saved)
    neg_giou = (enc_area - union) * pl.reciprocal(enc_area, approx=True) - iou

    out_ref[...] = w_bbox * cost_bbox + cost_class + w_giou * neg_giou


def compute_cost_matrix(pred_logits, pred_boxes, tgt_ids, tgt_boxes,
                        *, cost_class=1.0, cost_bbox=1.0, cost_giou=1.0,
                        row_tile=2048, col_tile=512):
    """Returns the matching-cost tensor C of shape [B, Q, T_total] (float32)."""
    B, Q, C = pred_logits.shape
    N = B * Q
    T = int(tgt_ids.shape[0])
    if T == 0:                     # batch with no targets: nothing to match
        return jnp.zeros((B, Q, 0), jnp.float32)

    # ---- column (target) padding: minimal lane-dense padding ------------------
    T_pad = _round_up(T, 128)
    TT = 128
    for cand in (512, 256, 128):
        if cand <= max(col_tile, 128) and T_pad % cand == 0:
            TT = cand
            break

    # ---- row (prediction) tiling: big tiles to amortize per-grid-step overhead
    N8 = _round_up(N, 8)
    TN = min(int(row_tile), N8)
    N_pad = _round_up(N8, TN)
    # if the whole grid would be a single step, split rows so both v7x cores work
    if N_pad // TN == 1 and T_pad // TT == 1 and N8 >= 16:
        TN = _round_up(N8 // 2, 8)
        N_pad = _round_up(N8, TN)

    # ---- softmax hoisted out of the kernel (computed once, not per column tile)
    logits = pred_logits.reshape(N, C).astype(jnp.float32)
    prob = jax.nn.softmax(logits, axis=-1)                          # [N, C]
    boxes = pred_boxes.reshape(N, 4).astype(jnp.float32)
    if N_pad > N:
        prob = jnp.pad(prob, ((0, N_pad - N), (0, 0)))
        # pad rows with a valid (non-degenerate) box to keep the math finite
        pad_rows = jnp.tile(jnp.array([[0.5, 0.5, 1.0, 1.0]], jnp.float32),
                            (N_pad - N, 1))
        boxes = jnp.concatenate([boxes, pad_rows], axis=0)

    ids = tgt_ids.astype(jnp.int32)
    tboxes = tgt_boxes.astype(jnp.float32)
    if T_pad > T:
        # sentinel class id C -> one-hot column of zeros -> cost_class = 0
        ids = jnp.concatenate([ids, jnp.full((T_pad - T,), C, jnp.int32)])
        pad_t = jnp.tile(jnp.array([[0.5, 0.5, 1.0, 1.0]], jnp.float32),
                         (T_pad - T, 1))
        tboxes = jnp.concatenate([tboxes, pad_t], axis=0)

    # one-hot class-gather matrix, pre-scaled by -cost_class (built once in XLA).
    # kept f32: bf16 prob/onehot would breach the 2e-3 accuracy budget near prob~1.
    neg_onehot = (-float(cost_class)) * (
        jnp.arange(C, dtype=jnp.int32)[:, None] == ids[None, :]
    ).astype(jnp.float32)                                           # [C, T_pad]
    tboxes_t = jnp.transpose(tboxes)                                # [4, T_pad]

    kernel = functools.partial(_cost_kernel, w_bbox=float(cost_bbox),
                               w_giou=float(cost_giou))

    grid = (N_pad // TN, T_pad // TT)
    cost = pl.pallas_call(
        kernel,
        out_shape=jax.ShapeDtypeStruct((N_pad, T_pad), jnp.float32),
        grid=grid,
        in_specs=[
            pl.BlockSpec((TN, C), lambda i, j: (i, 0)),   # prob: reused across T tiles
            pl.BlockSpec((TN, 4), lambda i, j: (i, 0)),   # pred boxes
            pl.BlockSpec((C, TT), lambda i, j: (0, j)),   # -w_class * one-hot
            pl.BlockSpec((4, TT), lambda i, j: (0, j)),   # target boxes (coords on sublanes)
        ],
        out_specs=pl.BlockSpec((TN, TT), lambda i, j: (i, j)),
        compiler_params=pltpu.CompilerParams(
            dimension_semantics=("parallel", "parallel"),
            vmem_limit_bytes=32 * 1024 * 1024),
    )(prob, boxes, neg_onehot, tboxes_t)

    return cost[:N, :T].reshape(B, Q, T)


def hungarian_matcher(outputs, targets, *, cost_class=1.0, cost_bbox=1.0, cost_giou=1.0):
    """JAX/Pallas equivalent of HungarianMatcher.forward."""
    sizes = [int(v["boxes"].shape[0]) for v in targets]
    if sum(sizes) == 0:
        B, Q, _ = outputs["pred_logits"].shape
        empty = np.zeros((0,), dtype=np.int64)
        return jnp.zeros((B, Q, 0), jnp.float32), [(empty, empty) for _ in targets]

    tgt_ids = jnp.concatenate([v["labels"] for v in targets])
    tgt_bbox = jnp.concatenate([v["boxes"] for v in targets])
    C = compute_cost_matrix(outputs["pred_logits"], outputs["pred_boxes"],
                            tgt_ids, tgt_bbox,
                            cost_class=cost_class, cost_bbox=cost_bbox,
                            cost_giou=cost_giou)
    C_np = np.asarray(jax.block_until_ready(C))
    # TODO(synk): linear_sum_assignment (Hungarian algorithm) is an inherently
    # sequential host-side algorithm with no clean Pallas equivalent; kept on host.
    splits = np.split(C_np, np.cumsum(sizes)[:-1], axis=-1)
    indices = [linear_sum_assignment(c[i]) for i, c in enumerate(splits)]
    return C, [(np.asarray(i, dtype=np.int64), np.asarray(j, dtype=np.int64))
               for i, j in indices]


def _reference_cost(pred_logits, pred_boxes, tgt_ids, tgt_boxes,
                    cost_class=1.0, cost_bbox=1.0, cost_giou=1.0):
    """Pure-jnp reference for correctness checking."""
    B, Q, Cc = pred_logits.shape
    prob = jax.nn.softmax(pred_logits.reshape(-1, Cc), axis=-1)
    out_bbox = pred_boxes.reshape(-1, 4)
    cc = -prob[:, tgt_ids]
    cb = jnp.sum(jnp.abs(out_bbox[:, None, :] - tgt_boxes[None, :, :]), axis=-1)

    def to_xyxy(b):
        cx, cy, w, h = b[..., 0], b[..., 1], b[..., 2], b[..., 3]
        return jnp.stack([cx - 0.5 * w, cy - 0.5 * h, cx + 0.5 * w, cy + 0.5 * h], -1)

    b1, b2 = to_xyxy(out_bbox), to_xyxy(tgt_boxes)
    a1 = (b1[:, 2] - b1[:, 0]) * (b1[:, 3] - b1[:, 1])
    a2 = (b2[:, 2] - b2[:, 0]) * (b2[:, 3] - b2[:, 1])
    lt = jnp.maximum(b1[:, None, :2], b2[None, :, :2])
    rb = jnp.minimum(b1[:, None, 2:], b2[None, :, 2:])
    wh = jnp.clip(rb - lt, 0)
    inter = wh[..., 0] * wh[..., 1]
    union = a1[:, None] + a2[None, :] - inter
    iou = inter / union
    lt2 = jnp.minimum(b1[:, None, :2], b2[None, :, :2])
    rb2 = jnp.maximum(b1[:, None, 2:], b2[None, :, 2:])
    wh2 = jnp.clip(rb2 - lt2, 0)
    area = wh2[..., 0] * wh2[..., 1]
    giou = iou - (area - union) / area
    C = cost_bbox * cb + cost_class * cc + cost_giou * (-giou)
    return C.reshape(B, Q, -1)


if __name__ == "__main__":
    key = jax.random.PRNGKey(0)
    B, Q, NUM_CLASSES = 2, 8, 32
    sizes = [3, 5]                                   # targets per image

    k1, k2, k3, k4, k5 = jax.random.split(key, 5)
    pred_logits = jax.random.normal(k1, (B, Q, NUM_CLASSES), dtype=jnp.float32)
    pcxy = jax.random.uniform(k2, (B, Q, 2), minval=0.2, maxval=0.8)
    pwh = jax.random.uniform(k3, (B, Q, 2), minval=0.05, maxval=0.3)
    pred_boxes = jnp.concatenate([pcxy, pwh], axis=-1).astype(jnp.float32)

    targets = []
    tkeys = jax.random.split(k4, len(sizes) * 2)
    lkeys = jax.random.split(k5, len(sizes))
    for i, s in enumerate(sizes):
        tcxy = jax.random.uniform(tkeys[2 * i], (s, 2), minval=0.2, maxval=0.8)
        twh = jax.random.uniform(tkeys[2 * i + 1], (s, 2), minval=0.05, maxval=0.3)
        labels = jax.random.randint(lkeys[i], (s,), 0, NUM_CLASSES, dtype=jnp.int32)
        targets.append({"labels": labels,
                        "boxes": jnp.concatenate([tcxy, twh], -1).astype(jnp.float32)})

    outputs = {"pred_logits": pred_logits, "pred_boxes": pred_boxes}

    C_pallas, indices = hungarian_matcher(outputs, targets,
                                          cost_class=1.0, cost_bbox=1.0, cost_giou=1.0)
    C_pallas = jax.block_until_ready(C_pallas)

    # correctness check against a pure-jnp reference.
    # tolerance accounts for the EUP approx reciprocals (~2^-12 relative) used for
    # the [N,T] IoU/GIoU divides inside the kernel.
    tgt_ids = jnp.concatenate([v["labels"] for v in targets])
    tgt_bbox = jnp.concatenate([v["boxes"] for v in targets])
    C_ref = _reference_cost(pred_logits, pred_boxes, tgt_ids, tgt_bbox)
    np.testing.assert_allclose(np.asarray(C_pallas), np.asarray(C_ref),
                               rtol=2e-3, atol=2e-3)

    for i, (ii, jj) in enumerate(indices):
        assert len(ii) == len(jj) == min(Q, sizes[i])

    print("KERNEL_OK")
</pallas_src>

<mosaic_0001>
module attributes {stable_mosaic.version = 11 : i64} {
  func.func @_cost_kernel(%arg0: i32, %arg1: i32, %arg2: memref<8x32xf32, #tpu.memory_space<vmem>>, %arg3: memref<8x4xf32, #tpu.memory_space<vmem>>, %arg4: memref<32x128xf32, #tpu.memory_space<vmem>>, %arg5: memref<4x128xf32, #tpu.memory_space<vmem>>, %arg6: memref<8x128xf32, #tpu.memory_space<vmem>>) attributes {dimension_semantics = [#tpu.dimension_semantics<parallel>, #tpu.dimension_semantics<parallel>], iteration_bounds = array<i64: 2, 1>, scalar_prefetch = 0 : i64, scratch_operands = 0 : i64, tpu.core_type = #tpu.core_type<tc>, window_params = [{transform_indices = @transform_0, window_bounds = array<i64: 8, 32>}, {transform_indices = @transform_1, window_bounds = array<i64: 8, 4>}, {transform_indices = @transform_2, window_bounds = array<i64: 32, 128>}, {transform_indices = @transform_3, window_bounds = array<i64: 4, 128>}, {transform_indices = @transform_4, window_bounds = array<i64: 8, 128>}]} {
    %c0 = arith.constant 0 : index
    %c0_0 = arith.constant 0 : index
    %0 = vector.load %arg2[%c0, %c0_0] : memref<8x32xf32, #tpu.memory_space<vmem>>, vector<8x32xf32>
    %c0_1 = arith.constant 0 : index
    %c0_2 = arith.constant 0 : index
    %1 = vector.load %arg4[%c0_1, %c0_2] : memref<32x128xf32, #tpu.memory_space<vmem>>, vector<32x128xf32>
    %cst = arith.constant dense<0.000000e+00> : vector<8x128xf32>
    %2 = tpu.matmul %0, %1, %cst {dimension_numbers = #tpu.dot_dimension_numbers<[1], [0], [0], [1], [0, 0, 1, 1], [], []>} : vector<8x32xf32>, vector<32x128xf32>, vector<8x128xf32> -> vector<8x128xf32>
    %c0_3 = arith.constant 0 : index
    %c0_4 = arith.constant 0 : index
    %3 = vector.load %arg3[%c0_3, %c0_4] : memref<8x4xf32, #tpu.memory_space<vmem>>, vector<8x4xf32>
    %4 = vector.extract_strided_slice %3 {offsets = [0, 0], sizes = [8, 1], strides = [1, 1]} : vector<8x4xf32> to vector<8x1xf32>
    %5 = vector.extract_strided_slice %3 {offsets = [0, 1], sizes = [8, 1], strides = [1, 1]} : vector<8x4xf32> to vector<8x1xf32>
    %6 = vector.extract_strided_slice %3 {offsets = [0, 2], sizes = [8, 1], strides = [1, 1]} : vector<8x4xf32> to vector<8x1xf32>
    %7 = vector.extract_strided_slice %3 {offsets = [0, 3], sizes = [8, 1], strides = [1, 1]} : vector<8x4xf32> to vector<8x1xf32>
    %c0_5 = arith.constant 0 : index
    %c0_6 = arith.constant 0 : index
    %8 = vector.load %arg5[%c0_5, %c0_6] : memref<4x128xf32, #tpu.memory_space<vmem>>, vector<4x128xf32>
    %9 = vector.extract_strided_slice %8 {offsets = [0, 0], sizes = [1, 128], strides = [1, 1]} : vector<4x128xf32> to vector<1x128xf32>
    %10 = vector.extract_strided_slice %8 {offsets = [1, 0], sizes = [1, 128], strides = [1, 1]} : vector<4x128xf32> to vector<1x128xf32>
    %11 = vector.extract_strided_slice %8 {offsets = [2, 0], sizes = [1, 128], strides = [1, 1]} : vector<4x128xf32> to vector<1x128xf32>
    %12 = vector.extract_strided_slice %8 {offsets = [3, 0], sizes = [1, 128], strides = [1, 1]} : vector<4x128xf32> to vector<1x128xf32>
    %13 = vector.broadcast %4 : vector<8x1xf32> to vector<8x128xf32>
    %14 = vector.broadcast %9 : vector<1x128xf32> to vector<8x128xf32>
    %15 = arith.subf %13, %14 : vector<8x128xf32>
    %16 = math.absf %15 : vector<8x128xf32>
    %17 = vector.broadcast %5 : vector<8x1xf32> to vector<8x128xf32>
    %18 = vector.broadcast %10 : vector<1x128xf32> to vector<8x128xf32>
    %19 = arith.subf %17, %18 : vector<8x128xf32>
    %20 = math.absf %19 : vector<8x128xf32>
    %21 = arith.addf %16, %20 : vector<8x128xf32>
    %22 = vector.broadcast %6 : vector<8x1xf32> to vector<8x128xf32>
    %23 = vector.broadcast %11 : vector<1x128xf32> to vector<8x128xf32>
    %24 = arith.subf %22, %23 : vector<8x128xf32>
    %25 = math.absf %24 : vector<8x128xf32>
    %26 = arith.addf %21, %25 : vector<8x128xf32>
    %27 = vector.broadcast %7 : vector<8x1xf32> to vector<8x128xf32>
    %28 = vector.broadcast %12 : vector<1x128xf32> to vector<8x128xf32>
    %29 = arith.subf %27, %28 : vector<8x128xf32>
    %30 = math.absf %29 : vector<8x128xf32>
    %31 = arith.addf %26, %30 : vector<8x128xf32>
    %cst_7 = arith.constant 5.000000e-01 : f32
    %32 = vector.broadcast %cst_7 : f32 to vector<8x1xf32>
    %33 = arith.mulf %32, %6 : vector<8x1xf32>
    %34 = arith.subf %4, %33 : vector<8x1xf32>
    %cst_8 = arith.constant 5.000000e-01 : f32
    %35 = vector.broadcast %cst_8 : f32 to vector<8x1xf32>
    %36 = arith.mulf %35, %6 : vector<8x1xf32>
    %37 = arith.addf %4, %36 : vector<8x1xf32>
    %cst_9 = arith.constant 5.000000e-01 : f32
    %38 = vector.broadcast %cst_9 : f32 to vector<8x1xf32>
    %39 = arith.mulf %38, %7 : vector<8x1xf32>
    %40 = arith.subf %5, %39 : vector<8x1xf32>
    %cst_10 = arith.constant 5.000000e-01 : f32
    %41 = vector.broadcast %cst_10 : f32 to vector<8x1xf32>
    %42 = arith.mulf %41, %7 : vector<8x1xf32>
    %43 = arith.addf %5, %42 : vector<8x1xf32>
    %cst_11 = arith.constant 5.000000e-01 : f32
    %44 = vector.broadcast %cst_11 : f32 to vector<1x128xf32>
    %45 = arith.mulf %44, %11 : vector<1x128xf32>
    %46 = arith.subf %9, %45 : vector<1x128xf32>
    %cst_12 = arith.constant 5.000000e-01 : f32
    %47 = vector.broadcast %cst_12 : f32 to vector<1x128xf32>
    %48 = arith.mulf %47, %11 : vector<1x128xf32>
    %49 = arith.addf %9, %48 : vector<1x128xf32>
    %cst_13 = arith.constant 5.000000e-01 : f32
    %50 = vector.broadcast %cst_13 : f32 to vector<1x128xf32>
    %51 = arith.mulf %50, %12 : vector<1x128xf32>
    %52 = arith.subf %10, %51 : vector<1x128xf32>
    %cst_14 = arith.constant 5.000000e-01 : f32
    %53 = vector.broadcast %cst_14 : f32 to vector<1x128xf32>
    %54 = arith.mulf %53, %12 : vector<1x128xf32>
    %55 = arith.addf %10, %54 : vector<1x128xf32>
    %56 = arith.subf %37, %34 : vector<8x1xf32>
    %57 = arith.subf %43, %40 : vector<8x1xf32>
    %58 = arith.mulf %56, %57 : vector<8x1xf32>
    %59 = arith.subf %49, %46 : vector<1x128xf32>
    %60 = arith.subf %55, %52 : vector<1x128xf32>
    %61 = arith.mulf %59, %60 : vector<1x128xf32>
    %62 = vector.broadcast %37 : vector<8x1xf32> to vector<8x128xf32>
    %63 = vector.broadcast %49 : vector<1x128xf32> to vector<8x128xf32>
    %64 = arith.minimumf %62, %63 : vector<8x128xf32>
    %65 = vector.broadcast %34 : vector<8x1xf32> to vector<8x128xf32>
    %66 = vector.broadcast %46 : vector<1x128xf32> to vector<8x128xf32>
    %67 = arith.maximumf %65, %66 : vector<8x128xf32>
    %68 = arith.subf %64, %67 : vector<8x128xf32>
    %cst_15 = arith.constant 0.000000e+00 : f32
    %69 = vector.broadcast %cst_15 : f32 to vector<8x128xf32>
    %70 = arith.maximumf %68, %69 : vector<8x128xf32>
    %71 = vector.broadcast %43 : vector<8x1xf32> to vector<8x128xf32>
    %72 = vector.broadcast %55 : vector<1x128xf32> to vector<8x128xf32>
    %73 = arith.minimumf %71, %72 : vector<8x128xf32>
    %74 = vector.broadcast %40 : vector<8x1xf32> to vector<8x128xf32>
    %75 = vector.broadcast %52 : vector<1x128xf32> to vector<8x128xf32>
    %76 = arith.maximumf %74, %75 : vector<8x128xf32>
    %77 = arith.subf %73, %76 : vector<8x128xf32>
    %cst_16 = arith.constant 0.000000e+00 : f32
    %78 = vector.broadcast %cst_16 : f32 to vector<8x128xf32>
    %79 = arith.maximumf %77, %78 : vector<8x128xf32>
    %80 = arith.mulf %70, %79 : vector<8x128xf32>
    %81 = vector.broadcast %58 : vector<8x1xf32> to vector<8x128xf32>
    %82 = vector.broadcast %61 : vector<1x128xf32> to vector<8x128xf32>
    %83 = arith.addf %81, %82 : vector<8x128xf32>
    %84 = arith.subf %83, %80 : vector<8x128xf32>
    %85 = tpu.reciprocal %84 {approx = true} : vector<8x128xf32> -> vector<8x128xf32>
    %86 = arith.mulf %80, %85 : vector<8x128xf32>
    %87 = vector.broadcast %37 : vector<8x1xf32> to vector<8x128xf32>
    %88 = vector.broadcast %49 : vector<1x128xf32> to vector<8x128xf32>
    %89 = arith.maximumf %87, %88 : vector<8x128xf32>
    %90 = vector.broadcast %34 : vector<8x1xf32> to vector<8x128xf32>
    %91 = vector.broadcast %46 : vector<1x128xf32> to vector<8x128xf32>
    %92 = arith.minimumf %90, %91 : vector<8x128xf32>
    %93 = arith.subf %89, %92 : vector<8x128xf32>
    %94 = vector.broadcast %43 : vector<8x1xf32> to vector<8x128xf32>
    %95 = vector.broadcast %55 : vector<1x128xf32> to vector<8x128xf32>
    %96 = arith.maximumf %94, %95 : vector<8x128xf32>
    %97 = vector.broadcast %40 : vector<8x1xf32> to vector<8x128xf32>
    %98 = vector.broadcast %52 : vector<1x128xf32> to vector<8x128xf32>
    %99 = arith.minimumf %97, %98 : vector<8x128xf32>
    %100 = arith.subf %96, %99 : vector<8x128xf32>
    %101 = arith.mulf %93, %100 : vector<8x128xf32>
    %102 = arith.subf %101, %84 : vector<8x128xf32>
    %103 = tpu.reciprocal %101 {approx = true} : vector<8x128xf32> -> vector<8x128xf32>
    %104 = arith.mulf %102, %103 : vector<8x128xf32>
    %105 = arith.subf %104, %86 : vector<8x128xf32>
    %cst_17 = arith.constant 1.000000e+00 : f32
    %106 = vector.broadcast %cst_17 : f32 to vector<8x128xf32>
    %107 = arith.mulf %106, %31 : vector<8x128xf32>
    %108 = arith.addf %107, %2 : vector<8x128xf32>
    %cst_18 = arith.constant 1.000000e+00 : f32
    %109 = vector.broadcast %cst_18 : f32 to vector<8x128xf32>
    %110 = arith.mulf %109, %105 : vector<8x128xf32>
    %111 = arith.addf %108, %110 : vector<8x128xf32>
    %c0_19 = arith.constant 0 : index
    %c0_20 = arith.constant 0 : index
    %112 = vector.load %arg6[%c0_19, %c0_20] : memref<8x128xf32, #tpu.memory_space<vmem>>, vector<8x128xf32>
    tpu.vector_store %arg6[%c0_19, %c0_20], %111 {strides = array<i32>} : memref<8x128xf32, #tpu.memory_space<vmem>>, vector<8x128xf32>,
    return
  }
  func.func @transform_0(%arg0: i32, %arg1: i32) -> (i32, i32) {
    %c0_i32 = arith.constant 0 : i32
    %c0_i32_0 = arith.constant 0 : i32
    return %arg0, %c0_i32 : i32, i32
  }
  func.func @transform_1(%arg0: i32, %arg1: i32) -> (i32, i32) {
    %c0_i32 = arith.constant 0 : i32
    %c0_i32_0 = arith.constant 0 : i32
    return %arg0, %c0_i32 : i32, i32
  }
  func.func @transform_2(%arg0: i32, %arg1: i32) -> (i32, i32) {
    %c0_i32 = arith.constant 0 : i32
    %c0_i32_0 = arith.constant 0 : i32
    return %c0_i32, %arg1 : i32, i32
  }
  func.func @transform_3(%arg0: i32, %arg1: i32) -> (i32, i32) {
    %c0_i32 = arith.constant 0 : i32
    %c0_i32_0 = arith.constant 0 : i32
    return %c0_i32, %arg1 : i32, i32
  }
  func.func @transform_4(%arg0: i32, %arg1: i32) -> (i32, i32) {
    %c0_i32 = arith.constant 0 : i32
    return %arg0, %arg1 : i32, i32
  }
}

</mosaic_0001>

<bundles_post_ra>
// kernel: tpu_custom_call.1
= control target key start
LH: loop header
LB: loop body
LE: loop exit
PB: predicated region body
PF: predicated region fallthrough
CT: control target
= control target key end

     0   :  { %9 = vsyncpa [#allocation3], 0  ;;  %s1043_s0 = inlined_call_operand.vmem [shape: f32[16,32], index: 0, kind: input, shape index: {}]   ;;  %s1044_s1 = inlined_call_operand.vmem [shape: f32[16,4], index: 1, kind: input, shape index: {}]   ;;  %s1045_s2 = inlined_call_operand.hbm [shape: f32[32,128], index: 2, kind: input, shape index: {}]   ;;  %s1046_s3 = inlined_call_operand.vmem [shape: f32[4,128], index: 3, kind: input, shape index: {}]   ;;  %s1047_s4 = inlined_call_operand.hbm [shape: f32[16,128], index: 4, kind: output, shape index: {}]  }
   0x1   :  { %10 = vsyncpa [#allocation4], 0 }
   0x2   :  { %12 = vsyncpa [#allocation4 + $0x1], 0  ;;  %s884_s15 = smov 0   ;;  %s886_s16 = smov 0  }
   0x3   :  { %s888_s17 = smov 0   ;;  %s890_s18 = smov 0  }
   0x4   :  { %s892_s19 = smov 0   ;;  %s894_s20 = smov 0  }
   0x5 LB: > { %s606_s21 = sadd.s32 4294967295, %s844_s20   ;;  %s607_s22 = sadd.s32 4294967294, %s844_s20   ;;  %s844_s20 = sphi %s894_s20, %s18_s20   ;;  %s840_s19 = sphi %s892_s19, %s1065_s19   ;;  %s836_s18 = sphi %s890_s18, %s1064_s18   ;;  %s832_s17 = sphi %s888_s17, %s1063_s17   ;;  %s828_s16 = sphi %s886_s16, %s1062_s16   ;;  %s824_s15 = sphi %s884_s15, %s1061_s15  }
   0x6   : > { %s30_s23 = sadd.s32 1, %s840_s19  ;;  %s143_s24 = sadd.s32 1, %s832_s17 }
   0x7   : > { %p32_p0 = scmp.ge.s32.totalorder %s30_s23, 2  ;;  %p153_p1 = scmp.ne.s32.totalorder %s832_s17, %s828_s16 }
   0x8   : > { %p154_p2 = scmp.eq.s32.totalorder %s606_s21, 1  ;;  %p159_p3 = scmp.ne.s32.totalorder %s828_s16, %s824_s15 }
   0x9   : > { %s1067_s23 = smov (%p32_p0, %s30_s23), 0  ;;  %p160_p5 = scmp.eq.s32.totalorder %s607_s22, 1 }
   0xa   : > { %p924_p4 = por %p154_p2, %p153_p1  ;;  %s138_s26 = ssub.s32 %s840_s19, %s1067_s23 }
   0xb   : > { %p608_p6 = scmp.ge.s32.totalorder %s844_s20, 1  ;;  %p141_p7 = scmp.eq.s32.totalorder %s138_s26, 0 }
   0xc   : > { %s1052_s25 = scalar_select %p924_p4, 1, 0 }
   0xd   : > { %p931_p8 = por %p160_p5, %p159_p3  ;;  %p167_p9 = scmp.lt.s32.totalorder %s844_s20, 3 }
   0xe   : > { %s937_s28 = scalar_select %p141_p7, %s832_s17, %s143_s24  }
   0xf   : > { %s1053_s27 = scalar_select %p931_p8, 1, 0 }
  0x10   : > { %p939_p10 = pnand %p608_p6, %p167_p9  ;;  %p943_p11 = scmp.eq.s32.totalorder %s606_s21, 0 }
  0x11   : > { %s846_s5 = smov [#allocation2]   ;;  %s734_s10 = scalar_lea.hbm %s1045_s2, 512 }
  0x12   : > { %s1054_s29 = scalar_select %p939_p10, 1, 0 }
  0x13   : > { %s1055_s30 = scalar_select %p943_p11, 1, 0 }
  0x14   : > { %p650_p12 = pneg %p939_p10  ;;  %s181_s6 = sshll.u32 %s846_s5, 4  ;;  %s182_s6 = int_to_ptr.vmem [resolvable:$true] %s181_s6 }
  0x15   : > { %p735_p0 = scmp.ne.s32.totalorder %s1045_s2, %s734_s10  ;;  %p741_p5 = scmp.lt.u32.totalorder %s734_s10, %s1045_s2 }
  0x16   : > { %p951_p13 = pnand %p943_p11, %p650_p12 }
  0x18   : > { %p736_p1 = pneg %p951_p13 }
  0x1a   : > { %p737_p2 = pnand %p736_p1, %p735_p0 }
  0x1c   : > { %p738_p3 = pneg %p737_p2 }
  0x1e   : > { %p743_p6 = pnand %p741_p5, %p738_p3 }
  0x20   : > { %746 = shalt.err (!%p743_p6)
}
  0x21   : > { %s747_s21 = scalar_lea.vmem %s182_s6, 512  ;;  %p755_p8 = scmp.lt.s32.totalorder %s182_s6, %s182_s6 }
  0x22   : > { %p748_p7 = scmp.ne.s32.totalorder %s182_s6, %s747_s21  ;;  %p756_p4 = scmp.lt.s32.totalorder %s747_s21, %s747_s21 }
  0x24   : > { %p750_p9 = pnand %p748_p7, %p736_p1  ;;  %p757_p11 = por %p756_p4, %p755_p8 }
  0x26   : > { %p751_p12 = pneg %p750_p9 }
  0x28   : > { %p758_p10 = pnand %p757_p11, %p751_p12 }
  0x2a   : > { %761 = shalt.err (!%p758_p10)
}
  0x2b   : > { %s847_s22 = smov 128   ;;  %s848_s24 = smov 8  }
  0x2c   : > { %653 = dma.hbm_to_vmem [thread:$0]  (!%p951_p13), %s1045_s2, 512, %s182_s6, [#allocation3], %s847_s22, %s847_s22, %s848_s24  }
  0x2d   : > { %p1057_p0 = scmp.ne.s32.totalorder %s1054_s29, 0 }
  0x2e   : > { %p1058_p2 = scmp.ne.s32.totalorder (!%p1057_p0), %s1055_s30, 0 }
  0x2f   : > { %218 = sbr.rel (%p1057_p0) target bundleno = 464 (0x1d0), region = 36 }
  0x36   : > { %815 = dma.done.wait (%p1058_p2), [#allocation3], 512  }
  0x37   : > { %817 = vsyncadd (%p1058_p2), [#allocation3], 4294966784  ;;  %p251_p4 = scmp.lt.s32.totalorder %s836_s18, 1  ;;  %v849_v0 = vmov 0   ;;  %v850_v1 = vmov 1   ;;  %v264_v4 = vld [vmem:[#allocation2] sm:$0xff]  ;;  %v349_v26 = vlaneseq }
  0x38   : > { %721 = vset.pattern.permute.xlu1 %v849_v0  ;;  %722 = vset.pattern.permute.xlu0 %v850_v1  ;;  %v265_v5 = vld [vmem:[#allocation2 + $0x8] sm:$0xff]  ;;  %v266_v6 = vld [vmem:[#allocation2 + $0x10] sm:$0xff]  ;;  %v851_v7 = vmov 0.0|0.0   ;;  %v267_v9 = vld [vmem:[#allocation2 + $0x18] sm:$0xff]  ;;  %s852_s30 = smov 126   ;;  %vm853_vm0 = vmmov 0  }
  0x39   : > { %s252_s8 = scalar_select %p251_p4, %s836_s18, 1  ;;  %638 = vmatprep.subr.bf16.mxu0 %v851_v7  ;;  %v639_v8 = vpack.c.bf16 %v265_v5, %v264_v4  ;;  %v854_v10 = vmov 0.0   ;;  %v642_v11 = vpack.c.bf16 %v267_v9, %v266_v6  ;;  %vm268_vm1 = vcmask 261120   ;;  %v343_v23 = vld [vmem:[%s1046_s3] sm:$0xf] }
  0x3a   : > { %635 = vmatprep.mubr.msk.f32.mxu0 %vm853_vm0, %v854_v10  ;;  %s855_s13 = smov 127   ;;  %v856_v17 = vmov 3   ;;  %v857_v20 = vmov 2   ;;  %v395_v25 = vmul.f32 0.5, %v343_v23  ;;  %v350_v29 = vshrl.u32 %v349_v26, 7  ;;  %s248_s22 = sand.u32 1, %s828_s16  }
  0x3b   : > { %s615_s7 = sshll.u32 %s252_s8, 3  ;;  %640 = vmatpush3.bf16.msra.mxu0 %v639_v8  ;;  %s614_s24 = sshll.u32 %s248_s22, 3 }
  0x3c   : > { %s258_s29 = scalar_lea.vmem %s1044_s1, %s615_s7  ;;  %641 = vmatprep.subr.bf16.mxu0 %v851_v7  ;;  %s254_s12 = scalar_lea.vmem %s1043_s0, %s615_s7  ;;  %v397_v27 = vrot.slane %v395_v25, 2  ;;  %v361_v32 = vsub.s32 1, %v350_v29  ;;  %v351_v33 = vsub.s32 0, %v350_v29  ;;  %v383_v63 = vsub.s32 3, %v350_v29 }
  0x3d   : > { %v342_v2 = vld [vmem:[%s258_s29] sm:$0xff]  ;;  %s619_s26 = sshll.u32 %s836_s18, 7  ;;  %s250_s5 = scalar_lea.vmem [#allocation5], %s614_s24 }
  0x3e   : > { %v388_v3 = vmul.f32 0.5, %v342_v2  ;;  %v263_v12 = vld [vmem:[%s254_s12] sm:$0xff]  ;;  %v400_v30 = vadd.f32 %v397_v27, %v343_v23  ;;  %v399_v31 = vsub.f32 %v343_v23, %v397_v27  ;;  %v352_v62 = vrot.slane %v343_v23, %v351_v33  ;;  %s497_s8 = sshll.u32 %s250_s5, 4  ;;  %s996_s6 = scalar_lea.hbm %s1047_s4, %s619_s26  ;;  %s998_s8 = int_to_ptr.vmem [resolvable:$true] %s497_s8 }
  0x3f   : > { %643 = vmatpush3.bf16.msra.mxu0 %v642_v11  ;;  %v384_v6 = vrot.slane %v343_v23, %v383_v63  ;;  %s483_s29 = scalar_lea.sflag [#allocation4], %s248_s22  ;;  %p1059_p10 = scmp.ne.s32.totalorder %s1052_s25, 0 }
  0x40   : > { %390 = vrot.lane.b32.xlu0 %v388_v3, %s852_s30  ;;  %v450_v34 = vrot.slane %v399_v31, %v361_v32  ;;  %v407_v35 = vsub.f32 %v400_v30, %v399_v31  ;;  %v430_v37 = vrot.slane %v399_v31, %v351_v33  ;;  %v441_v38 = vrot.slane %v400_v30, %v361_v32  ;;  %s762_s30 = scalar_lea.vmem %s998_s8, 128  ;;  %s858_s18 = smov [#allocation5]  }
  0x41   : > { %v420_v40 = vrot.slane %v400_v30, %v351_v33  ;;  %v372_v3 = vsub.s32 2, %v350_v29  ;;  %p763_p8 = scmp.ne.s32.totalorder %s998_s8, %s762_s30  ;;  %s766_s10 = sshll.u32 %s858_s18, 4  ;;  %s767_s10 = int_to_ptr.vmem [resolvable:$false] %s766_s10 }
  0x42   : > { %636 = vmatmul.mubr.msk.f32.vlgmr.msra.gmra.mrb[0].mxu0 %vm268_vm1, %v263_v12  ;;  %v409_v42 = vrot.slane %v407_v35, 1  ;;  %s768_s11 = scalar_lea.vmem %s767_s10, 256  ;;  %p769_p1 = scmp.lt.s32.totalorder %s998_s8, %s767_s10 }
  0x43   : > { %v373_v9 = vrot.slane %v343_v23, %v372_v3  ;;  %p764_p11 = pnand %p763_p8, %p1059_p10  ;;  %p770_p3 = scmp.lt.s32.totalorder %s768_s11, %s762_s30 }
  0x44   : > { %v411_v48 = vmul.f32 %v409_v42, %v407_v35 }
  0x45   : > { %p765_p13 = pneg %p764_p11  ;;  %p771_p5 = por %p770_p3, %p769_p1 }
  0x46   : > { %v463_v55 = vrot.slane %v411_v48, %v351_v33 }
  0x47   : > { %p772_p6 = pnand %p771_p5, %p765_p13 }
  0xb2   : > { %v391_v13 = vpop.permute.xlu0 %390 }
  0xb3   : > { %v393_v14 = vsub.f32 %v342_v2, %v391_v13  ;;  %v394_v15 = vadd.f32 %v391_v13, %v342_v2 }
  0xb5   : > { %414 = vperm.xlu1 %721, %v394_v15   ;;  %v401_v16 = vsub.f32 %v394_v15, %v393_v14 }
  0xb7   : > { %403 = vrot.lane.b32.xlu0 %v401_v16, %s855_s13 }
  0xb9   : > { %424 = vperm.xlu1 %721, %v393_v14  }
  0xbb   : > { %435 = vperm.xlu0 %722, %v394_v15  }
  0xbd   : > { %723 = vset.pattern.permute.xlu1 %v850_v1 }
  0xbe   : > { %444 = vperm.xlu1 %723, %v393_v14  }
  0xbf   : > { %725 = vset.pattern.permute.xlu0 %v849_v0 }
  0xc0   : > { %346 = vperm.xlu0 %725, %v342_v2  }
  0xc2   : > { %724 = vset.pattern.permute.xlu1 %v849_v0 }
  0xc4   : > { %728 = vset.pattern.permute.xlu0 %v856_v17 }
  0xc5   : > { %378 = vperm.xlu0 %728, %v342_v2  }
  0xc9   : > { %729 = vset.pattern.permute.xlu0 %v849_v0  ;;  %v362_v0 = vrot.slane %v343_v23, %v361_v32 }
 0x115   : > { %v985_v21 = vpop.f32.mrb[0].mxu0 }
 0x116   : > { %v637_v22 = vpop.f32.mrb[1].mxu0 }
 0x129   : > { %v404_v18 = vpop.permute.xlu0 %403 }
 0x12a   : > { %v406_v19 = vmul.f32 %v404_v18, %v401_v16 }
 0x12c   : > { %457 = vperm.xlu1 %724, %v406_v19  }
 0x130   : > { %726 = vset.pattern.permute.xlu1 %v850_v1 }
 0x131   : > { %356 = vperm.xlu1 %726, %v342_v2  }
 0x134   : > { %v415_v24 = vpop.permute.xlu1 %414 }
 0x135   : > { %727 = vset.pattern.permute.xlu1 %v857_v20  ;;  %v421_v46 = vmin.f32 %v415_v24, %v420_v40  ;;  %v468_v52 = vmax.f32 %v415_v24, %v420_v40 }
 0x136   : > { %367 = vperm.xlu1 %727, %v342_v2  }
 0x138   : > { %v425_v28 = vpop.permute.xlu1 %424 }
 0x139   : > { %v431_v43 = vmax.f32 %v425_v28, %v430_v37  ;;  %v469_v49 = vmin.f32 %v425_v28, %v430_v37 }
 0x13a   : > { %v436_v39 = vpop.permute.xlu0 %435 }
 0x13b   : > { %v442_v44 = vmin.f32 %v436_v39, %v441_v38  ;;  %v471_v50 = vmax.f32 %v436_v39, %v441_v38  ;;  %v432_v51 = vsub.f32 %v421_v46, %v431_v43  ;;  %v470_v56 = vsub.f32 %v468_v52, %v469_v49 }
 0x13d   : > { %v445_v36 = vpop.permute.xlu1 %444  ;;  %v433_v57 = vmax.f32 %v432_v51, 0.0 }
 0x13e   : > { %v451_v41 = vmax.f32 %v445_v36, %v450_v34  ;;  %v472_v45 = vmin.f32 %v445_v36, %v450_v34 }
 0x13f   : > { %v347_v1 = vpop.permute.xlu0 %346 }
 0x140   : > { %v452_v47 = vsub.f32 %v442_v44, %v451_v41  ;;  %v473_v53 = vsub.f32 %v471_v50, %v472_v45  ;;  %v353_v5 = vsub.f32 %v347_v1, %v352_v62 }
 0x142   : > { %v453_v54 = vmax.f32 %v452_v47, 0.0  ;;  %v474_v58 = vmul.f32 %v473_v53, %v470_v56  ;;  %v354_v11 = vand.u32 2147483647, %v353_v5 }
 0x144   : > { %v454_v60 = vmul.f32 %v453_v54, %v433_v57  ;;  %730 = vrcp.f32 %v474_v58  ;;  %v379_v8 = vpop.permute.xlu0 %378 }
 0x145   : > { %v385_v12 = vsub.f32 %v379_v8, %v384_v6 }
 0x147   : > { %v386_v18 = vand.u32 2147483647, %v385_v12 }
 0x14e   : > { %v731_v19 = vpop.eup %730 }
 0x1ab   : > { %v458_v59 = vpop.permute.xlu1 %457 }
 0x1ac   : > { %v464_v61 = vadd.f32 %v463_v55, %v458_v59 }
 0x1ae   : > { %v465_v2 = vsub.f32 %v464_v61, %v454_v60 }
 0x1b0   : > { %732 = vrcp.f32 %v465_v2  ;;  %v357_v4 = vpop.permute.xlu1 %356  ;;  %v475_v15 = vsub.f32 %v474_v58, %v465_v2 }
 0x1b1   : > { %v363_v7 = vsub.f32 %v357_v4, %v362_v0 }
 0x1b2   : > { %v477_v25 = vmul.f32 %v731_v19, %v475_v15 }
 0x1b3   : > { %v364_v10 = vand.u32 2147483647, %v363_v7 }
 0x1b5   : > { %v368_v13 = vpop.permute.xlu1 %367  ;;  %v365_v16 = vadd.f32 %v364_v10, %v354_v11 }
 0x1b6   : > { %v374_v14 = vsub.f32 %v368_v13, %v373_v9 }
 0x1b8   : > { %v375_v17 = vand.u32 2147483647, %v374_v14 }
 0x1ba   : > { %v733_v20 = vpop.eup %732  ;;  %v376_v22 = vadd.f32 %v375_v17, %v365_v16 }
 0x1bb   : > { %v467_v24 = vmul.f32 %v733_v20, %v454_v60 }
 0x1bc   : > { %v387_v26 = vadd.f32 %v386_v18, %v376_v22 }
 0x1bd   : > { %v478_v23 = vsub.f32 %v477_v25, %v467_v24 }
 0x1be   : > { %v479_v27 = vadd.f32 %v387_v26, %v985_v21 }
 0x1c0   : > { %v480_v28 = vadd.f32 %v479_v27, %v478_v23 }
 0x1c2   : > { %481 = vst [vmem:[%s250_s5] sm:$0xff] %v480_v28 }
 0x1c3   : > { %775 = shalt.err (!%p772_p6)
}
 0x1c4   : > { %s776_s12 = scalar_lea.hbm %s996_s6, 128  ;;  %s780_s21 = scalar_lea.hbm %s1047_s4, 256 }
 0x1c5   : > { %p777_p7 = scmp.ne.s32.totalorder %s996_s6, %s776_s12  ;;  %p781_p0 = scmp.lt.u32.totalorder %s996_s6, %s1047_s4 }
 0x1c6   : > { %p782_p2 = scmp.lt.u32.totalorder %s780_s21, %s776_s12  ;;  %p784_p8 = scmp.lt.u32.totalorder %s776_s12, %s996_s6 }
 0x1c7   : > { %p778_p9 = pnand %p777_p7, %p1059_p10 }
 0x1c8   : > { %p783_p4 = por %p782_p2, %p781_p0 }
 0x1c9   : > { %p779_p12 = pneg %p778_p9 }
 0x1ca   : > { %p785_p11 = por %p784_p8, %p783_p4 }
 0x1cc   : > { %p786_p13 = pnand %p785_p11, %p779_p12 }
 0x1ce   : > { %789 = shalt.err (!%p786_p13)
}
 0x1cf   : > { %648 = dma.vmem_to_hbm [thread:$0]  (%p1059_p10), %s998_s8, 128, %s996_s6, %s483_s29  }
 0x1d0 PF: > { %p660_p1 = scmp.ge.s32.totalorder %s844_s20, 2  ;;  %s509_s26 = sand.u32 1, %s824_s15  }
 0x1d1   : > { %p1060_p3 = scmp.ne.s32.totalorder %s1053_s27, 0  ;;  %s510_s5 = scalar_lea.sflag [#allocation4], %s509_s26 }
 0x1d3   : > { %p655_p5 = pnand %p660_p1, %p1060_p3 }
 0x1d5   : > { %819 = dma.done.wait (!%p655_p5), %s510_s5, 128  }
 0x1d6   : > { %821 = vsyncadd (!%p655_p5), %s510_s5, 4294967168  ;;  %s18_s20 = sadd.s32 1, %s844_s20   ;;  %s1061_s15 = smov %s828_s16 }
 0x1d7   : > { %p15_p6 = scmp.ge.s32.totalorder %s18_s20, 4   ;;  %s1062_s16 = smov %s832_s17 }
 0x1d8   : > { %s1063_s17 = smov %s937_s28  ;;  %s1064_s18 = smov %s840_s19 }
 0x1d9   : > { %s1065_s19 = smov %s1067_s23  ;;  %17 = sbr.rel (!%p15_p6) target bundleno = 5 (0x5), region = 83 }
 0x1e0   :  { %515 = vsyncpa [#allocation3], 1 }
 0x1e1   :  { %517 = vsyncpa [#allocation3 + $0x1], 1 }
 0x1e2   :  { %518 = vsyncpa [#allocation4], 1 }
 0x1e3   :  { %520 = vsyncpa [#allocation4 + $0x1], 1 }

</bundles_post_ra>
